<compile_context>
chip_gen: v7x
topology: tpu7x:2x2x1
jax: 0.10.0
libtpu: 0.0.40
codegen_flags: <defaults>
</compile_context>

<pallas_src>
import math
import jax
import jax.numpy as jnp
from jax.experimental import pallas as pl
from jax.experimental.pallas import tpu as pltpu

# ---------------- problem sizes (small, consistent with the module) ----------------
B = 2        # batch
L = 8        # sequence length
C_IN = 4     # c_in (value channels)
D_MODEL = 32 # d_model (even, for sin/cos interleave)

HOUR_SIZE, WEEKDAY_SIZE, DAY_SIZE, MONTH_SIZE = 24, 7, 32, 13

# packed-operand lane layout (K = 128 = MXU / lane width)
K_PACK = 128
CONV_COLS = 3 * C_IN                          # lanes 0..11 : x_prev | x | x_next
OFF_HOUR = CONV_COLS                          # lanes 12..35
OFF_WDAY = OFF_HOUR + HOUR_SIZE               # lanes 36..42
OFF_DAY = OFF_WDAY + WEEKDAY_SIZE             # lanes 43..74
OFF_MONTH = OFF_DAY + DAY_SIZE                # lanes 75..87
N_USED = OFF_MONTH + MONTH_SIZE               # 88 used lanes, 88..127 zero-pad

# The single OR-combined one-hot is only valid because the four ranges are
# disjoint; guard against future size changes.
assert OFF_WDAY == OFF_HOUR + HOUR_SIZE
assert OFF_DAY == OFF_WDAY + WEEKDAY_SIZE
assert OFF_MONTH == OFF_DAY + DAY_SIZE
assert N_USED <= K_PACK


# ---------------- parameter construction (deterministic, in-script) ----------------
def fixed_embedding_table(c_in, d_model):
    """FixedEmbedding weight: sinusoidal table, identical to the PyTorch code."""
    pos = jnp.arange(c_in, dtype=jnp.float32)[:, None]                      # (c_in, 1)
    div = jnp.exp(jnp.arange(0, d_model, 2, dtype=jnp.float32)
                  * (-math.log(10000.0) / d_model))                         # (d_model/2,)
    w = jnp.zeros((c_in, d_model), dtype=jnp.float32)
    w = w.at[:, 0::2].set(jnp.sin(pos * div))
    w = w.at[:, 1::2].set(jnp.cos(pos * div))
    return w


def token_conv_weight(key, c_in, d_model):
    """Conv1d(c_in, d_model, k=3, bias=False), kaiming_normal_(fan_in, leaky_relu).
    Returned pre-transposed as (3, c_in, d_model) so out[t] = sum_k x[t+k-1] @ W[k]."""
    fan_in = c_in * 3
    gain = math.sqrt(2.0 / (1.0 + 0.01 ** 2))          # leaky_relu default slope
    std = gain / math.sqrt(fan_in)
    w = jax.random.normal(key, (d_model, c_in, 3), dtype=jnp.float32) * std  # torch layout
    return jnp.transpose(w, (2, 1, 0))                  # (out, in, k) -> (k, in, out)


def pack_weights(w_conv, hour_t, wday_t, day_t, month_t):
    """Fuse the Conv1d taps + four fixed temporal tables into one (128, d_model)
    matrix. Built ONCE at init — hoisted out of the per-call path."""
    d = w_conv.shape[-1]
    pad = jnp.zeros((K_PACK - N_USED, d), jnp.float32)
    return jnp.concatenate(
        [w_conv[0], w_conv[1], w_conv[2],               # rows 0..11  (conv taps)
         hour_t, wday_t, day_t, month_t,                # rows 12..87 (temporal tables)
         pad],                                          # rows 88..127
        axis=0)                                         # (128, d_model)


# ---------------- Pallas kernel ----------------
def data_embedding_kernel(op_ref, ids_ref, w_ref, o_ref):
    # op_ref : (rows, 128) f32  lane-padded [x_prev | x | x_next | zeros]
    # ids_ref: (rows, 4)   i32  pre-offset one-hot lane indices (month, day, wday, hour)
    # w_ref  : (128, D)    f32  packed conv taps + temporal tables
    # o_ref  : (rows, D)   f32
    rows = op_ref.shape[0]
    ids = ids_ref[...]
    iota = jax.lax.broadcasted_iota(jnp.int32, (rows, K_PACK), 1)
    # Four broadcast-compares OR'd into one one-hot over the full 128 lanes
    # (ranges are disjoint by construction). Out-of-range mark indices silently
    # drop their embedding contribution instead of erroring like nn.Embedding.
    hit = ((iota == ids[:, 0:1]) | (iota == ids[:, 1:2])
           | (iota == ids[:, 2:3]) | (iota == ids[:, 3:4]))
    packed = op_ref[...] + hit.astype(jnp.float32)      # full-vreg VALU add, no lane concat

    # Single MXU pass: value embedding + temporal embedding in one dot.
    # Dropout(p=0.1) is identity in eval mode.
    # TODO(synk): at production d_model (multiple of 128) this store is lane-dense;
    # at D=32 the masked store is negligible. bf16 operands would cut MXU passes
    # ~3x but loosen the 1e-4-level tolerance, so kept f32 here.
    o_ref[...] = jnp.dot(packed, w_ref[...],
                         preferred_element_type=jnp.float32).astype(o_ref.dtype)


def _row_tile(m):
    """Row tile for the grid: full problem if small, else <=512 rows per tile
    (sized against v7x's 64 MiB VMEM / 32 MiB scoped default with headroom)."""
    if m <= 512:
        return m
    for t in (512, 256, 128, 64, 32, 16, 8):
        if m % t == 0:
            return t
    return m


@jax.jit
def data_embedding_wo_pos(x, x_mark, w_pack):
    """x: (B, L, C_IN) f32, x_mark: (B, L, 4) i32 [month, day, weekday, hour],
    w_pack: (128, d_model) f32  ->  (B, L, d_model) f32."""
    Bn, Ln, Cn = x.shape
    Dn = w_pack.shape[-1]
    M = Bn * Ln

    # Circular Conv1d(k=3, padding=1) neighbours, packed into a lane-padded
    # (M, 128) operand so the kernel never concatenates 4-lane fragments.
    x_prev = jnp.roll(x, 1, axis=1)
    x_next = jnp.roll(x, -1, axis=1)
    operand = jnp.concatenate(
        [x_prev, x, x_next,
         jnp.zeros((Bn, Ln, K_PACK - 3 * Cn), jnp.float32)],
        axis=-1).reshape(M, K_PACK)

    # Pre-offset the mark ids once: each field's one-hot lane index.
    offs = jnp.array([OFF_MONTH, OFF_DAY, OFF_WDAY, OFF_HOUR], jnp.int32)
    ids = (x_mark.astype(jnp.int32) + offs).reshape(M, 4)

    tile = _row_tile(M)
    out = pl.pallas_call(
        data_embedding_kernel,
        out_shape=jax.ShapeDtypeStruct((M, Dn), jnp.float32),
        grid_spec=pltpu.PrefetchScalarGridSpec(
            num_scalar_prefetch=0,
            grid=(M // tile,),
            in_specs=[
                pl.BlockSpec((tile, K_PACK), lambda i: (i, 0)),   # packed operand
                pl.BlockSpec((tile, 4), lambda i: (i, 0)),        # pre-offset ids
                pl.BlockSpec((K_PACK, Dn), lambda i: (0, 0)),     # packed weights (resident)
            ],
            out_specs=pl.BlockSpec((tile, Dn), lambda i: (i, 0)),
        ),
        compiler_params=pltpu.CompilerParams(
            dimension_semantics=("parallel",)),                   # uses both TCs on v7x
    )(operand, ids, w_pack)
    return out.reshape(Bn, Ln, Dn)


# ---------------- pure-JAX reference for a correctness check ----------------
def reference(x, x_mark, w_conv, hour_t, wday_t, day_t, month_t):
    hp = jax.lax.Precision.HIGHEST
    x_prev = jnp.roll(x, 1, axis=1)
    x_next = jnp.roll(x, -1, axis=1)
    val = (jnp.matmul(x_prev, w_conv[0], precision=hp)
           + jnp.matmul(x, w_conv[1], precision=hp)
           + jnp.matmul(x_next, w_conv[2], precision=hp))
    temp = (hour_t[x_mark[..., 3]] + wday_t[x_mark[..., 2]]
            + day_t[x_mark[..., 1]] + month_t[x_mark[..., 0]])
    return val + temp


if __name__ == "__main__":
    key = jax.random.PRNGKey(0)
    k_x, k_w, k_m1, k_m2, k_m3, k_m4 = jax.random.split(key, 6)

    x = jax.random.normal(k_x, (B, L, C_IN), dtype=jnp.float32)
    # x_mark columns: [month, day, weekday, hour]  (freq='h', no minute column used)
    x_mark = jnp.stack(
        [jax.random.randint(k_m1, (B, L), 0, MONTH_SIZE),
         jax.random.randint(k_m2, (B, L), 0, DAY_SIZE),
         jax.random.randint(k_m3, (B, L), 0, WEEKDAY_SIZE),
         jax.random.randint(k_m4, (B, L), 0, HOUR_SIZE)],
        axis=-1).astype(jnp.int32)                                # (B, L, 4)

    w_conv = token_conv_weight(k_w, C_IN, D_MODEL)                # (3, C_IN, D)
    hour_t = fixed_embedding_table(HOUR_SIZE, D_MODEL)
    wday_t = fixed_embedding_table(WEEKDAY_SIZE, D_MODEL)
    day_t = fixed_embedding_table(DAY_SIZE, D_MODEL)
    month_t = fixed_embedding_table(MONTH_SIZE, D_MODEL)

    # one-time packed weight (init-time, not in the per-call path)
    w_pack = pack_weights(w_conv, hour_t, wday_t, day_t, month_t)  # (128, D)

    out = data_embedding_wo_pos(x, x_mark, w_pack)
    out = jax.block_until_ready(out)

    ref = reference(x, x_mark, w_conv, hour_t, wday_t, day_t, month_t)
    assert out.shape == (B, L, D_MODEL)
    # Tolerance chosen deliberately: the in-kernel dot uses the default MXU f32
    # precision while the reference pins Precision.HIGHEST.
    assert jnp.allclose(out, ref, atol=5e-4, rtol=5e-4), "mismatch vs JAX reference"

    print("KERNEL_OK")
</pallas_src>

<mosaic_0001>
module attributes {stable_mosaic.version = 11 : i64} {
  func.func @data_embedding_kernel(%arg0: i32, %arg1: memref<16x128xf32, #tpu.memory_space<vmem>>, %arg2: memref<16x4xi32, #tpu.memory_space<vmem>>, %arg3: memref<128x32xf32, #tpu.memory_space<vmem>>, %arg4: memref<16x32xf32, #tpu.memory_space<vmem>>) attributes {dimension_semantics = [#tpu.dimension_semantics<parallel>], iteration_bounds = array<i64: 1>, scalar_prefetch = 0 : i64, scratch_operands = 0 : i64, tpu.core_type = #tpu.core_type<tc>, window_params = [{transform_indices = @transform_0, window_bounds = array<i64: 16, 128>}, {transform_indices = @transform_1, window_bounds = array<i64: 16, 4>}, {pipeline_mode = #tpu.pipeline_mode<synchronous>, transform_indices = @transform_2, window_bounds = array<i64: 128, 32>}, {transform_indices = @transform_3, window_bounds = array<i64: 16, 32>}]} {
    %c0 = arith.constant 0 : index
    %c0_0 = arith.constant 0 : index
    %0 = vector.load %arg2[%c0, %c0_0] : memref<16x4xi32, #tpu.memory_space<vmem>>, vector<16x4xi32>
    %1 = tpu.iota {dimensions = array<i32: 1>} : vector<16x128xi32>
    %2 = vector.extract_strided_slice %0 {offsets = [0, 0], sizes = [16, 1], strides = [1, 1]} : vector<16x4xi32> to vector<16x1xi32>
    %3 = vector.broadcast %2 : vector<16x1xi32> to vector<16x128xi32>
    %4 = arith.cmpi eq, %1, %3 : vector<16x128xi32>
    %5 = vector.extract_strided_slice %0 {offsets = [0, 1], sizes = [16, 1], strides = [1, 1]} : vector<16x4xi32> to vector<16x1xi32>
    %6 = vector.broadcast %5 : vector<16x1xi32> to vector<16x128xi32>
    %7 = arith.cmpi eq, %1, %6 : vector<16x128xi32>
    %8 = arith.ori %4, %7 : vector<16x128xi1>
    %9 = vector.extract_strided_slice %0 {offsets = [0, 2], sizes = [16, 1], strides = [1, 1]} : vector<16x4xi32> to vector<16x1xi32>
    %10 = vector.broadcast %9 : vector<16x1xi32> to vector<16x128xi32>
    %11 = arith.cmpi eq, %1, %10 : vector<16x128xi32>
    %12 = arith.ori %8, %11 : vector<16x128xi1>
    %13 = vector.extract_strided_slice %0 {offsets = [0, 3], sizes = [16, 1], strides = [1, 1]} : vector<16x4xi32> to vector<16x1xi32>
    %14 = vector.broadcast %13 : vector<16x1xi32> to vector<16x128xi32>
    %15 = arith.cmpi eq, %1, %14 : vector<16x128xi32>
    %16 = arith.ori %12, %15 : vector<16x128xi1>
    %c0_1 = arith.constant 0 : index
    %c0_2 = arith.constant 0 : index
    %17 = vector.load %arg1[%c0_1, %c0_2] : memref<16x128xf32, #tpu.memory_space<vmem>>, vector<16x128xf32>
    %18 = arith.extui %16 : vector<16x128xi1> to vector<16x128xi32>
    %19 = arith.sitofp %18 : vector<16x128xi32> to vector<16x128xf32>
    %20 = arith.addf %17, %19 : vector<16x128xf32>
    %c0_3 = arith.constant 0 : index
    %c0_4 = arith.constant 0 : index
    %21 = vector.load %arg3[%c0_3, %c0_4] : memref<128x32xf32, #tpu.memory_space<vmem>>, vector<128x32xf32>
    %cst = arith.constant dense<0.000000e+00> : vector<16x32xf32>
    %22 = tpu.matmul %20, %21, %cst {dimension_numbers = #tpu.dot_dimension_numbers<[1], [0], [0], [1], [0, 0, 1, 1], [], []>} : vector<16x128xf32>, vector<128x32xf32>, vector<16x32xf32> -> vector<16x32xf32>
    %c0_5 = arith.constant 0 : index
    %c0_6 = arith.constant 0 : index
    %23 = vector.load %arg4[%c0_5, %c0_6] : memref<16x32xf32, #tpu.memory_space<vmem>>, vector<16x32xf32>
    tpu.vector_store %arg4[%c0_5, %c0_6], %22 {strides = array<i32>} : memref<16x32xf32, #tpu.memory_space<vmem>>, vector<16x32xf32>,
    return
  }
  func.func @transform_0(%arg0: i32) -> (i32, i32) {
    %c0_i32 = arith.constant 0 : i32
    %c0_i32_0 = arith.constant 0 : i32
    return %arg0, %c0_i32 : i32, i32
  }
  func.func @transform_1(%arg0: i32) -> (i32, i32) {
    %c0_i32 = arith.constant 0 : i32
    %c0_i32_0 = arith.constant 0 : i32
    return %arg0, %c0_i32 : i32, i32
  }
  func.func @transform_2(%arg0: i32) -> (i32, i32) {
    %c0_i32 = arith.constant 0 : i32
    %c0_i32_0 = arith.constant 0 : i32
    %c0_i32_1 = arith.constant 0 : i32
    return %c0_i32, %c0_i32_0 : i32, i32
  }
  func.func @transform_3(%arg0: i32) -> (i32, i32) {
    %c0_i32 = arith.constant 0 : i32
    %c0_i32_0 = arith.constant 0 : i32
    return %arg0, %c0_i32 : i32, i32
  }
}

</mosaic_0001>

<bundles_post_ra>
// kernel: data_embedding_wo_pos.1
= control target key start
LH: loop header
LB: loop body
LE: loop exit
PB: predicated region body
PF: predicated region fallthrough
CT: control target
= control target key end

     0   :  { %v302_v2 = vmov 0   ;;  %s402_s0 = inlined_call_operand.vmem [shape: f32[16,128], index: 0, kind: input, shape index: {}]   ;;  %s403_s1 = inlined_call_operand.vmem [shape: s32[16,4], index: 1, kind: input, shape index: {}]   ;;  %s404_s2 = inlined_call_operand.vmem [shape: f32[128,32], index: 2, kind: input, shape index: {}]   ;;  %s405_s3 = inlined_call_operand.hbm [shape: f32[16,32], index: 3, kind: output, shape index: {}]  }
   0x1   :  { %v16_v0 = vld [vmem:[%s403_s1 + $0x8] sm:$0xff]  ;;  %v15_v1 = vld [vmem:[%s403_s1] sm:$0xff]  ;;  %272 = vset.pattern.permute.xlu1 %v302_v2  ;;  %270 = vset.pattern.permute.xlu0 %v302_v2  ;;  %v67_v5 = vld [vmem:[%s404_s2 + $0x10] sm:$0xff] }
   0x2   :  { %v65_v3 = vld [vmem:[%s404_s2] sm:$0xff]  ;;  %v66_v4 = vld [vmem:[%s404_s2 + $0x8] sm:$0xff]  ;;  %23 = vperm.xlu1 %272, %v16_v0   ;;  %20 = vperm.xlu0 %270, %v15_v1   ;;  %v68_v7 = vld [vmem:[%s404_s2 + $0x18] sm:$0xff] }
   0x3   :  { %v230_v6 = vpack.c.bf16 %v66_v4, %v65_v3  ;;  %v69_v8 = vld [vmem:[%s404_s2 + $0x20] sm:$0xff]  ;;  %v70_v9 = vld [vmem:[%s404_s2 + $0x28] sm:$0xff] }
   0x4   :  { %8 = vsyncpa [#allocation3], 0  ;;  %v234_v10 = vpack.c.bf16 %v68_v7, %v67_v5  ;;  %v303_v11 = vmov 1   ;;  %v238_v12 = vpack.c.bf16 %v70_v9, %v69_v8  ;;  %v71_v13 = vld [vmem:[%s404_s2 + $0x30] sm:$0xff]  ;;  %v72_v14 = vld [vmem:[%s404_s2 + $0x38] sm:$0xff]  ;;  %v304_v16 = vmov 2  }
   0x5   :  { %231 = vmatprep.subr.bf16.mxu0 %v230_v6  ;;  %v242_v15 = vpack.c.bf16 %v72_v14, %v71_v13  ;;  %v73_v17 = vld [vmem:[%s404_s2 + $0x40] sm:$0xff]  ;;  %v74_v18 = vld [vmem:[%s404_s2 + $0x48] sm:$0xff]  ;;  %v75_v20 = vld [vmem:[%s404_s2 + $0x50] sm:$0xff]  ;;  %v305_v22 = vmov 3   ;;  %v17_v32 = vlaneseq  ;;  %v306_v40 = vmov 0.0   ;;  %s307_s1 = smov [#allocation2]  }
   0x6   :  { %233 = vmatpush3.bf16.msra.mxu0 %v230_v6  ;;  %273 = vset.pattern.permute.xlu1 %v303_v11  ;;  %v246_v19 = vpack.c.bf16 %v74_v18, %v73_v17  ;;  %v76_v21 = vld [vmem:[%s404_s2 + $0x58] sm:$0xff]  ;;  %v77_v24 = vld [vmem:[%s404_s2 + $0x60] sm:$0xff]  ;;  %v78_v25 = vld [vmem:[%s404_s2 + $0x68] sm:$0xff]  ;;  %s164_s23 = sshll.u32 %s307_s1, 4  ;;  %vm156_vm14 = vcmask 261120   ;;  %s165_s23 = int_to_ptr.vmem [resolvable:$true] %s164_s23 }
   0x7   :  { %271 = vset.pattern.permute.xlu0 %v303_v11  ;;  %31 = vperm.xlu1 %273, %v16_v0   ;;  %v250_v23 = vpack.c.bf16 %v76_v21, %v75_v20  ;;  %v254_v26 = vpack.c.bf16 %v78_v25, %v77_v24  ;;  %v79_v27 = vld [vmem:[%s404_s2 + $0x70] sm:$0xff]  ;;  %v80_v28 = vld [vmem:[%s404_s2 + $0x78] sm:$0xff]  ;;  %v18_v34 = vand.u32 127, %v17_v32  ;;  %v57_v39 = vld [vmem:[%s402_s0] sm:$0xff]  ;;  %s278_s24 = scalar_lea.vmem %s165_s23, 256  ;;  %p283_p1 = scmp.lt.s32.totalorder %s165_s23, %s165_s23 }
   0x8   :  { %28 = vperm.xlu0 %271, %v15_v1   ;;  %235 = vmatprep.subr.bf16.mxu0 %v234_v10  ;;  %v258_v29 = vpack.c.bf16 %v80_v28, %v79_v27  ;;  %v58_v44 = vld [vmem:[%s402_s0 + $0x8] sm:$0xff]  ;;  %p279_p0 = scmp.ne.s32.totalorder %s165_s23, %s278_s24  ;;  %p284_p2 = scmp.lt.s32.totalorder %s278_s24, %s278_s24 }
   0xa   :  { %237 = vmatpush3.bf16.msra.mxu0 %v234_v10  ;;  %p285_p3 = por %p284_p2, %p283_p1 }
   0xb   :  { %239 = vmatprep.subr.bf16.mxu0 %v238_v12  ;;  %274 = vset.pattern.permute.xlu1 %v304_v16 }
   0xc   :  { %275 = vset.pattern.permute.xlu0 %v304_v16  ;;  %38 = vperm.xlu1 %274, %v15_v1   ;;  %p286_p4 = pnand %p285_p3, %p279_p0 }
   0xd   :  { %41 = vperm.xlu0 %275, %v16_v0  }
   0xe   :  { %241 = vmatpush3.bf16.msra.mxu0 %v238_v12 }
   0xf   :  { %243 = vmatprep.subr.bf16.mxu0 %v242_v15 }
  0x10   :  { %276 = vset.pattern.permute.xlu1 %v305_v22 }
  0x11   :  { %277 = vset.pattern.permute.xlu0 %v305_v22  ;;  %48 = vperm.xlu1 %276, %v15_v1  }
  0x12   :  { %245 = vmatpush3.bf16.msra.mxu0 %v242_v15 }
  0x13   :  { %247 = vmatprep.subr.bf16.mxu0 %v246_v19 }
  0x15   :  { %51 = vperm.xlu1 %276, %v16_v0  }
  0x16   :  { %249 = vmatpush3.bf16.msra.mxu0 %v246_v19 }
  0x17   :  { %251 = vmatprep.subr.bf16.mxu0 %v250_v23 }
  0x1a   :  { %253 = vmatpush3.bf16.msra.mxu0 %v250_v23 }
  0x1b   :  { %255 = vmatprep.subr.bf16.mxu0 %v254_v26 }
  0x1e   :  { %257 = vmatpush3.bf16.msra.mxu0 %v254_v26 }
  0x1f   :  { %259 = vmatprep.subr.bf16.mxu0 %v258_v29 }
  0x22   :  { %261 = vmatpush3.bf16.msra.mxu0 %v258_v29 }
  0x81   :  { %v24_v30 = vpop.permute.xlu1 %23  ;;  %v21_v31 = vpop.permute.xlu0 %20 }
  0x82   :  { %vm25_vm0 = vcmp.eq.s32.totalorder %v18_v34, %v21_v31  ;;  %vm26_vm9 = vcmp.eq.s32.totalorder %v18_v34, %v24_v30 }
  0x86   :  { %v32_v33 = vpop.permute.xlu1 %31 }
  0x87   :  { %v29_v35 = vpop.permute.xlu0 %28  ;;  %vm34_vm4 = vcmp.eq.s32.totalorder %v18_v34, %v32_v33 }
  0x88   :  { %vm33_vm1 = vcmp.eq.s32.totalorder %v18_v34, %v29_v35  ;;  %vm36_vm10 = vmor %vm26_vm9, %vm34_vm4 }
  0x89   :  { %vm35_vm2 = vmor %vm25_vm0, %vm33_vm1 }
  0x8b   :  { %v39_v36 = vpop.permute.xlu1 %38 }
  0x8c   :  { %vm43_vm3 = vcmp.eq.s32.totalorder %v18_v34, %v39_v36  ;;  %v42_v37 = vpop.permute.xlu0 %41 }
  0x8d   :  { %vm45_vm5 = vmor %vm35_vm2, %vm43_vm3  ;;  %vm44_vm7 = vcmp.eq.s32.totalorder %v18_v34, %v42_v37 }
  0x8e   :  { %vm46_vm11 = vmor %vm36_vm10, %vm44_vm7 }
  0x90   :  { %v49_v38 = vpop.permute.xlu1 %48 }
  0x91   :  { %vm53_vm6 = vcmp.eq.s32.totalorder %v18_v34, %v49_v38 }
  0x92   :  { %vm55_vm8 = vmor %vm45_vm5, %vm53_vm6 }
  0x93   :  { %v175_v41 = vsel %vm55_vm8, 1.0, %v306_v40 }
  0x94   :  { %v52_v42 = vpop.permute.xlu1 %51  ;;  %v63_v43 = vadd.f32 %v175_v41, %v57_v39 }
  0x95   :  { %vm54_vm12 = vcmp.eq.s32.totalorder %v18_v34, %v52_v42 }
  0x96   :  { %vm56_vm13 = vmor %vm46_vm11, %vm54_vm12  ;;  %227 = vmatprep.mubr.f32.mxu0 %v63_v43 }
  0x97   :  { %v176_v45 = vsel %vm56_vm13, 1.0, %v306_v40 }
  0x98   :  { %v64_v46 = vadd.f32 %v176_v45, %v58_v44 }
  0x9a   :  { %228 = vmatmul.mubr.f32.vlgmr.msra.gmra.mrb[0].mxu0 %v64_v46 }
 0x16d   :  { %v229_v47 = vpop.f32.mrb[0].mxu0 }
 0x16e   :  { %158 = vst.msk [vmem:[#allocation2 + $0x8] sm:$0xff] %vm156_vm14, %v229_v47  ;;  %v147_v48 = vpop.f32.mrb[1].mxu0 }
 0x16f   :  { %157 = vst.msk [vmem:[#allocation2] sm:$0xff] %vm156_vm14, %v147_v48 }
 0x170   :  { %289 = shalt.err (!%p286_p4)
}
 0x171   :  { %s290_s26 = scalar_lea.hbm %s405_s3, 256 }
 0x172   :  { %p291_p5 = scmp.ne.s32.totalorder %s405_s3, %s290_s26  ;;  %p294_p6 = scmp.lt.u32.totalorder %s290_s26, %s405_s3 }
 0x174   :  { %p296_p7 = pnand %p294_p6, %p291_p5 }
 0x176   :  { %299 = shalt.err (!%p296_p7)
}
 0x177   :  { %s308_s4 = smov 128   ;;  %s309_s5 = smov 8  }
 0x178   :  { %170 = dma.vmem_to_hbm [thread:$0]  %s165_s23, 256, %s405_s3, [#allocation3], %s308_s4, %s308_s4, %s309_s5  }
 0x179   :  { %300 = dma.done.wait [#allocation3], 256  }
 0x17a   :  { %301 = vsyncadd [#allocation3], 4294967040 }
 0x17b   :  { %174 = vsyncpa [#allocation3], 1 }

</bundles_post_ra>
